<compile_context>
chip_gen: v7x
topology: tpu7x:2x2x1
jax: 0.10.0
libtpu: 0.0.40
codegen_flags: <defaults>
</compile_context>

<pallas_src>
import functools

import jax
import jax.numpy as jnp
from jax.experimental import pallas as pl
from jax.experimental.pallas import tpu as pltpu


def _round_up(x, m):
    return ((x + m - 1) // m) * m


def _pick_row_tile(n_pad):
    # n_pad is a multiple of 128. Prefer the largest power-of-two tile that
    # still leaves >= 2 row tiles (keeps both v7x TensorCores busy); a single
    # 128-row tile only for the smallest graphs.
    for t in (1024, 512, 256, 128):
        if n_pad % t == 0 and n_pad // t >= 2:
            return t
    return 128


def _pick_k_tile(n_pad):
    # Reduction axis is sequential anyway; largest divisor <= 1024.
    for t in (1024, 512, 256, 128):
        if n_pad % t == 0:
            return t
    return 128


def _pick_out_tile(dout_pad):
    # Full layer width when the f32 (tm x tn) accumulator fits comfortably:
    # guarantees exactly one HBM pass over the N^2 adjacency per layer.
    if dout_pad <= 1024:
        return dout_pad
    for t in (1024, 512, 256, 128):
        if dout_pad % t == 0:
            return t
    return 128


# ----------------------------------------------------------------------------
# Kernel 1 (per layer, small): S = (d_is * X) @ W   ->  bf16 (N_pad, dout_pad)
# W stays resident across the row-tile axis (index_map ignores i).
# ----------------------------------------------------------------------------
def _scaled_xw_kernel(d_ref, x_ref, w_ref, o_ref):
    xs = (d_ref[...] * x_ref[...]).astype(jnp.bfloat16)
    o_ref[...] = jnp.dot(
        xs, w_ref[...], preferred_element_type=jnp.float32).astype(o_ref.dtype)


def scaled_xw(d_is, x, w, *, tm):
    n_pad, din_pad = x.shape
    dout_pad = w.shape[1]
    return pl.pallas_call(
        _scaled_xw_kernel,
        out_shape=jax.ShapeDtypeStruct((n_pad, dout_pad), jnp.bfloat16),
        grid_spec=pltpu.PrefetchScalarGridSpec(
            num_scalar_prefetch=0,
            grid=(n_pad // tm,),
            in_specs=[
                pl.BlockSpec((tm, 1), lambda i: (i, 0)),
                pl.BlockSpec((tm, din_pad), lambda i: (i, 0)),
                pl.BlockSpec((din_pad, dout_pad), lambda i: (0, 0)),  # resident
            ],
            out_specs=pl.BlockSpec((tm, dout_pad), lambda i: (i, 0)),
        ),
        compiler_params=pltpu.CompilerParams(
            dimension_semantics=("parallel",)),
    )(d_is, x, w)


# ----------------------------------------------------------------------------
# Kernel 2 (per layer, main): out = d_is * (A @ S) + b   [+ relu]
# Grid (row tile, out-col tile, k tile), reduction (k) last.  A is stored int8
# in HBM and upcast to bf16 on the VPU just before the MXU dot (upcast hides
# under the mem-bound DMA).  f32 accumulator in VMEM scratch: zeroed at k==0,
# epilogue (scale + bias + relu + cast) at the last k.  tn normally spans the
# full padded output width, so A is read from HBM exactly once per layer.
# ----------------------------------------------------------------------------
def _gcn_message_kernel(a_ref, s_ref, d_ref, b_ref, o_ref, acc_ref, *, apply_relu):
    k = pl.program_id(2)

    @pl.when(k == 0)
    def _():
        acc_ref[...] = jnp.zeros_like(acc_ref)

    # int8 -> f32 -> bf16 (explicit two-step cast keeps Mosaic on well-trodden
    # convert paths); bf16 x bf16 MXU matmul with f32 accumulation.
    a_bf16 = a_ref[...].astype(jnp.float32).astype(jnp.bfloat16)
    acc_ref[...] += jnp.dot(a_bf16, s_ref[...], preferred_element_type=jnp.float32)

    @pl.when(k == pl.num_programs(2) - 1)
    def _():
        out = d_ref[...] * acc_ref[...] + b_ref[...]
        if apply_relu:
            out = jnp.maximum(out, 0.0)
        o_ref[...] = out.astype(o_ref.dtype)


def gcn_message(a, s, d_is, b, *, apply_relu, out_dtype, tm, tn, tk):
    n_pad = a.shape[0]
    dout_pad = s.shape[1]
    return pl.pallas_call(
        functools.partial(_gcn_message_kernel, apply_relu=apply_relu),
        out_shape=jax.ShapeDtypeStruct((n_pad, dout_pad), out_dtype),
        grid_spec=pltpu.PrefetchScalarGridSpec(
            num_scalar_prefetch=0,
            grid=(n_pad // tm, dout_pad // tn, n_pad // tk),
            in_specs=[
                pl.BlockSpec((tm, tk), lambda i, j, k: (i, k)),   # A (int8)
                pl.BlockSpec((tk, tn), lambda i, j, k: (k, j)),   # S (bf16)
                pl.BlockSpec((tm, 1), lambda i, j, k: (i, 0)),    # d_is (f32)
                pl.BlockSpec((1, tn), lambda i, j, k: (0, j)),    # bias (f32)
            ],
            out_specs=pl.BlockSpec((tm, tn), lambda i, j, k: (i, j)),
            scratch_shapes=[pltpu.VMEM((tm, tn), jnp.float32)],
        ),
        compiler_params=pltpu.CompilerParams(
            dimension_semantics=("parallel", "parallel", "arbitrary")),
    )(a, s, d_is, b)


# ----------------------------------------------------------------------------
# Model wrapper. Parameters are synthetic / deterministic (no checkpoint).
# ----------------------------------------------------------------------------
class GCNModelPallas:
    def __init__(self, dims, activate_last=False, improved=False, key=None):
        assert len(dims) > 2
        self.dims = list(dims)
        self.activate_last = activate_last
        self.improved = improved
        key = jax.random.PRNGKey(42) if key is None else key
        self.weights = []       # unpadded f32 (for the pure-JAX reference)
        self.biases = []
        self.weights_pad = []   # lane-padded bf16 kernel operands
        self.biases_pad = []    # lane-padded f32 bias rows
        for d_in, d_out in zip(dims[:-1], dims[1:]):
            key, kw = jax.random.split(key)
            w = jax.random.normal(kw, (d_in, d_out), jnp.float32) * (1.0 / jnp.sqrt(d_in))
            b = jnp.zeros((1, d_out), jnp.float32)   # PyG GCNConv bias init = zeros
            self.weights.append(w)
            self.biases.append(b)
            d_in_p, d_out_p = _round_up(d_in, 128), _round_up(d_out, 128)
            w_p = jnp.zeros((d_in_p, d_out_p), jnp.float32).at[:d_in, :d_out].set(w)
            b_p = jnp.zeros((1, d_out_p), jnp.float32).at[:, :d_out].set(b)
            self.weights_pad.append(w_p.astype(jnp.bfloat16))
            self.biases_pad.append(b_p)

    def _build_dense_adjacency(self, edge_index, num_nodes, n_pad):
        # TODO(synk): dense O(N^2) scatter build is plain-JAX glue; for large
        # sparse graphs use a PrefetchScalarGridSpec row gather instead of A.
        # int8 counts are exact while every (dst, src) multiplicity plus the
        # self-loop fill stays <= 127 (heavier multigraphs would wrap).
        src = edge_index[0]
        dst = edge_index[1]
        a = jnp.zeros((n_pad, n_pad), jnp.int8)
        a = a.at[dst, src].add(jnp.ones(src.shape, jnp.int8))
        # add_remaining_self_loops: generated edges have no self loops.
        fill = 2 if self.improved else 1
        idx = jnp.arange(num_nodes)
        a = a.at[idx, idx].add(jnp.full((num_nodes,), fill, jnp.int8))
        return a

    def _inv_sqrt_degree(self, edge_index, num_nodes, n_pad):
        # O(E) scatter for deg[i] = sum_j A[i, j]; no pass over the N^2 matrix.
        fill = 2.0 if self.improved else 1.0
        dst = edge_index[1]
        deg = jnp.zeros((n_pad,), jnp.float32).at[dst].add(1.0)
        deg = deg.at[:num_nodes].add(fill)
        d_is = jnp.where(deg > 0.0, jax.lax.rsqrt(deg), 0.0)  # padded rows -> 0
        return d_is.reshape(n_pad, 1)

    def __call__(self, x, edge_index):
        n, f_in = x.shape
        n_pad = _round_up(max(n, 8), 128)          # pad to 128 only, not to tm
        tm = _pick_row_tile(n_pad)
        tk = _pick_k_tile(n_pad)

        a = self._build_dense_adjacency(edge_index, n, n_pad)   # (n_pad, n_pad) int8
        d_is = self._inv_sqrt_degree(edge_index, n, n_pad)      # (n_pad, 1) f32

        din_pad = _round_up(f_in, 128)
        h = jnp.zeros((n_pad, din_pad), jnp.float32).at[:n, :f_in].set(x)

        num_layers = len(self.weights_pad)
        for i, (w_p, b_p) in enumerate(zip(self.weights_pad, self.biases_pad)):
            is_last = i == num_layers - 1
            s = scaled_xw(d_is, h, w_p, tm=tm)                  # (n_pad, dout_pad) bf16
            relu_out = (not is_last) or self.activate_last
            dout_pad = w_p.shape[1]
            tn = _pick_out_tile(dout_pad)
            out_dtype = jnp.float32 if is_last else jnp.bfloat16  # bf16 inter-layer slab
            h = gcn_message(a, s, d_is, b_p, apply_relu=relu_out,
                            out_dtype=out_dtype, tm=tm, tn=tn, tk=tk)
        return h[:n, :self.dims[-1]]


# pure-JAX f32 reference for correctness checking
def reference_forward(model, x, edge_index):
    n = x.shape[0]
    src, dst = edge_index[0], edge_index[1]
    a = jnp.zeros((n, n), jnp.float32).at[dst, src].add(1.0)
    fill = 2.0 if model.improved else 1.0
    a = a + fill * jnp.eye(n, dtype=jnp.float32)
    deg = jnp.sum(a, axis=1, keepdims=True)
    d_is = jnp.where(deg > 0.0, 1.0 / jnp.sqrt(deg), 0.0)
    a_norm = d_is * a * d_is.T
    num_layers = len(model.weights)
    h = x
    for i, (w, b) in enumerate(zip(model.weights, model.biases)):
        h = a_norm @ (h @ w) + b
        if (i < num_layers - 1) or model.activate_last:
            h = jnp.maximum(h, 0.0)
    return h


if __name__ == "__main__":
    # small synthetic graph: N=16 nodes, dims=[8, 32, 16], E=24 edges
    dims = [8, 32, 16]
    N = 16
    E = 24

    key = jax.random.PRNGKey(0)
    kx, ks, kd = jax.random.split(key, 3)
    x = jax.random.normal(kx, (N, dims[0]), jnp.float32)
    src = jax.random.randint(ks, (E,), 0, N)
    # guarantee no self loops so add_remaining_self_loops adds one per node
    dst = (src + 1 + jax.random.randint(kd, (E,), 0, N - 1)) % N
    edge_index = jnp.stack([src, dst]).astype(jnp.int32)   # (2, E)

    model = GCNModelPallas(dims, activate_last=False, improved=False)

    out = jax.block_until_ready(model(x, edge_index))
    ref = reference_forward(model, x, edge_index)

    assert out.shape == (N, dims[-1])
    # int8 A is exact; X@W / W / inter-layer activations are bf16 with f32
    # accumulation -> expect ~1% relative error vs the f32 reference.
    assert jnp.allclose(out, ref, atol=5e-2, rtol=5e-2), "mismatch vs reference"

    print("KERNEL_OK")
</pallas_src>

<mosaic_0001>
module attributes {stable_mosaic.version = 11 : i64} {
  func.func @_scaled_xw_kernel(%arg0: i32, %arg1: memref<128x1xf32, #tpu.memory_space<vmem>>, %arg2: memref<128x128xf32, #tpu.memory_space<vmem>>, %arg3: memref<128x128xbf16, #tpu.memory_space<vmem>>, %arg4: memref<128x128xbf16, #tpu.memory_space<vmem>>) attributes {dimension_semantics = [#tpu.dimension_semantics<parallel>], iteration_bounds = array<i64: 1>, scalar_prefetch = 0 : i64, scratch_operands = 0 : i64, tpu.core_type = #tpu.core_type<tc>, window_params = [{transform_indices = @transform_0, window_bounds = array<i64: 128, 1>}, {transform_indices = @transform_1, window_bounds = array<i64: 128, 128>}, {pipeline_mode = #tpu.pipeline_mode<synchronous>, transform_indices = @transform_2, window_bounds = array<i64: 128, 128>}, {transform_indices = @transform_3, window_bounds = array<i64: 128, 128>}]} {
    %c0 = arith.constant 0 : index
    %c0_0 = arith.constant 0 : index
    %0 = vector.load %arg1[%c0, %c0_0] : memref<128x1xf32, #tpu.memory_space<vmem>>, vector<128x1xf32>
    %c0_1 = arith.constant 0 : index
    %c0_2 = arith.constant 0 : index
    %1 = vector.load %arg2[%c0_1, %c0_2] : memref<128x128xf32, #tpu.memory_space<vmem>>, vector<128x128xf32>
    %2 = vector.broadcast %0 : vector<128x1xf32> to vector<128x128xf32>
    %3 = arith.mulf %2, %1 : vector<128x128xf32>
    %4 = arith.truncf %3 : vector<128x128xf32> to vector<128x128xbf16>
    %c0_3 = arith.constant 0 : index
    %c0_4 = arith.constant 0 : index
    %5 = vector.load %arg3[%c0_3, %c0_4] : memref<128x128xbf16, #tpu.memory_space<vmem>>, vector<128x128xbf16>
    %cst = arith.constant dense<0.000000e+00> : vector<128x128xf32>
    %6 = tpu.matmul %4, %5, %cst {dimension_numbers = #tpu.dot_dimension_numbers<[1], [0], [0], [1], [0, 0, 1, 1], [], []>} : vector<128x128xbf16>, vector<128x128xbf16>, vector<128x128xf32> -> vector<128x128xf32>
    %7 = arith.truncf %6 : vector<128x128xf32> to vector<128x128xbf16>
    %c0_5 = arith.constant 0 : index
    %c0_6 = arith.constant 0 : index
    %8 = vector.load %arg4[%c0_5, %c0_6] : memref<128x128xbf16, #tpu.memory_space<vmem>>, vector<128x128xbf16>
    tpu.vector_store %arg4[%c0_5, %c0_6], %7 {strides = array<i32>} : memref<128x128xbf16, #tpu.memory_space<vmem>>, vector<128x128xbf16>,
    return
  }
  func.func @transform_0(%arg0: i32) -> (i32, i32) {
    %c0_i32 = arith.constant 0 : i32
    %c0_i32_0 = arith.constant 0 : i32
    return %arg0, %c0_i32 : i32, i32
  }
  func.func @transform_1(%arg0: i32) -> (i32, i32) {
    %c0_i32 = arith.constant 0 : i32
    %c0_i32_0 = arith.constant 0 : i32
    return %arg0, %c0_i32 : i32, i32
  }
  func.func @transform_2(%arg0: i32) -> (i32, i32) {
    %c0_i32 = arith.constant 0 : i32
    %c0_i32_0 = arith.constant 0 : i32
    %c0_i32_1 = arith.constant 0 : i32
    return %c0_i32, %c0_i32_0 : i32, i32
  }
  func.func @transform_3(%arg0: i32) -> (i32, i32) {
    %c0_i32 = arith.constant 0 : i32
    %c0_i32_0 = arith.constant 0 : i32
    return %arg0, %c0_i32 : i32, i32
  }
}

</mosaic_0001>

<bundles_post_ra>
// kernel: tpu_custom_call.1
= control target key start
LH: loop header
LB: loop body
LE: loop exit
PB: predicated region body
PF: predicated region fallthrough
CT: control target
= control target key end

     0   :  { %8 = vsyncpa [#allocation3], 0  ;;  %s789_s0 = inlined_call_operand.vmem [shape: f32[128,1], index: 0, kind: input, shape index: {}]   ;;  %s790_s1 = inlined_call_operand.vmem [shape: f32[128,128], index: 1, kind: input, shape index: {}]   ;;  %s791_s2 = inlined_call_operand.hbm [shape: bf16[128,128], index: 2, kind: input, shape index: {}]   ;;  %s792_s3 = inlined_call_operand.hbm [shape: bf16[128,128], index: 3, kind: output, shape index: {}]  }
   0x1   :  { %9 = vsyncpa [#allocation4], 0  ;;  %s638_s12 = smov [#allocation2]   ;;  %s590_s16 = scalar_lea.hbm %s791_s2, 1024 }
   0x2   :  { %s19_s13 = sshll.u32 %s638_s12, 4  ;;  %p591_p0 = scmp.ne.s32.totalorder %s791_s2, %s590_s16  ;;  %s20_s13 = int_to_ptr.vmem [resolvable:$true] %s19_s13 }
   0x3   :  { %p594_p1 = scmp.lt.u32.totalorder %s590_s16, %s791_s2 }
   0x5   :  { %p596_p2 = pnand %p594_p1, %p591_p0 }
   0x7   :  { %599 = shalt.err (!%p596_p2)
}
   0x8   :  { %s600_s21 = scalar_lea.vmem %s20_s13, 1024  ;;  %p605_p4 = scmp.lt.s32.totalorder %s20_s13, %s20_s13 }
   0x9   :  { %p601_p3 = scmp.ne.s32.totalorder %s20_s13, %s600_s21  ;;  %p606_p5 = scmp.lt.s32.totalorder %s600_s21, %s600_s21 }
   0xb   :  { %p607_p6 = por %p606_p5, %p605_p4 }
   0xd   :  { %p608_p7 = pnand %p607_p6, %p601_p3 }
   0xf   :  { %611 = shalt.err (!%p608_p7)
}
  0x10   :  { %s639_s22 = smov 64   ;;  %s640_s23 = smov 4  }
  0x11   :  { %25 = dma.hbm_to_vmem [thread:$0]  %s791_s2, 1024, %s20_s13, [#allocation3], %s639_s22, %s639_s22, %s640_s23  }
  0x12   :  { %634 = dma.done.wait [#allocation3], 1024  }
  0x13   :  { %635 = vsyncadd [#allocation3], 4294966272  ;;  %v641_v0 = vmov 0   ;;  %v38_v1 = vld [vmem:[%s789_s0 + $0x40] sm:$0xff]  ;;  %v39_v3 = vld [vmem:[%s789_s0 + $0x48] sm:$0xff] }
  0x14   :  { %581 = vset.pattern.permute.xlu1 %v641_v0  ;;  %580 = vset.pattern.permute.xlu0 %v641_v0  ;;  %v30_v2 = vld [vmem:[%s789_s0] sm:$0xff]  ;;  %v31_v4 = vld [vmem:[%s789_s0 + $0x8] sm:$0xff]  ;;  %v33_v5 = vld [vmem:[%s789_s0 + $0x18] sm:$0xff] }
  0x15   :  { %104 = vperm.xlu1 %581, %v38_v1   ;;  %64 = vperm.xlu0 %580, %v30_v2   ;;  %v32_v6 = vld [vmem:[%s789_s0 + $0x10] sm:$0xff]  ;;  %v582_v7 = vld [vmem:[#allocation2] sm:$0xff]   ;;  %v583_v8 = vld [vmem:[#allocation2 + $0x8] sm:$0xff]  }
  0x16   :  { %527 = vmatprep.subr.bf16.mxu0 %v582_v7  ;;  %559 = vmatprep.subr.bf16.mxu1 %v582_v7  ;;  %v41_v9 = vld [vmem:[%s789_s0 + $0x58] sm:$0xff]  ;;  %v40_v10 = vld [vmem:[%s789_s0 + $0x50] sm:$0xff]  ;;  %v35_v12 = vld [vmem:[%s789_s0 + $0x28] sm:$0xff] }
  0x17   :  { %528 = vmatpush3.bf16.msra.mxu0 %v582_v7  ;;  %567 = vmatpush3.bf16.msra.mxu1 %v582_v7  ;;  %v584_v11 = vld [vmem:[#allocation2 + $0x10] sm:$0xff]   ;;  %v34_v13 = vld [vmem:[%s789_s0 + $0x20] sm:$0xff]  ;;  %v585_v14 = vld [vmem:[#allocation2 + $0x18] sm:$0xff]  }
  0x18   :  { %529 = vmatprep.subr.bf16.mxu0 %v583_v8  ;;  %560 = vmatprep.subr.bf16.mxu1 %v583_v8  ;;  %v43_v15 = vld [vmem:[%s789_s0 + $0x68] sm:$0xff]  ;;  %v42_v16 = vld [vmem:[%s789_s0 + $0x60] sm:$0xff]  ;;  %v37_v18 = vld [vmem:[%s789_s0 + $0x38] sm:$0xff] }
  0x19   :  { %109 = vperm.xlu1 %581, %v39_v3   ;;  %69 = vperm.xlu0 %580, %v31_v4   ;;  %v586_v17 = vld [vmem:[#allocation2 + $0x20] sm:$0xff]   ;;  %v36_v19 = vld [vmem:[%s789_s0 + $0x30] sm:$0xff]  ;;  %v587_v20 = vld [vmem:[#allocation2 + $0x28] sm:$0xff]  }
  0x1a   :  { %v45_v21 = vld [vmem:[%s789_s0 + $0x78] sm:$0xff]  ;;  %v44_v22 = vld [vmem:[%s789_s0 + $0x70] sm:$0xff]  ;;  %v54_v27 = vld [vmem:[%s790_s1 + $0x40] sm:$0xff] }
  0x1b   :  { %530 = vmatpush3.bf16.msra.mxu0 %v583_v8  ;;  %568 = vmatpush3.bf16.msra.mxu1 %v583_v8  ;;  %v588_v23 = vld [vmem:[#allocation2 + $0x30] sm:$0xff]   ;;  %v589_v24 = vld [vmem:[#allocation2 + $0x38] sm:$0xff]   ;;  %v46_v28 = vld [vmem:[%s790_s1] sm:$0xff] }
  0x1c   :  { %531 = vmatprep.subr.bf16.mxu0 %v584_v11  ;;  %561 = vmatprep.subr.bf16.mxu1 %v584_v11  ;;  %v55_v29 = vld [vmem:[%s790_s1 + $0x48] sm:$0xff]  ;;  %v49_v37 = vld [vmem:[%s790_s1 + $0x18] sm:$0xff]  ;;  %v48_v38 = vld [vmem:[%s790_s1 + $0x10] sm:$0xff] }
  0x1d   :  { %79 = vperm.xlu1 %581, %v33_v5   ;;  %74 = vperm.xlu0 %580, %v32_v6   ;;  %v47_v30 = vld [vmem:[%s790_s1 + $0x8] sm:$0xff]  ;;  %v57_v45 = vld [vmem:[%s790_s1 + $0x58] sm:$0xff]  ;;  %v56_v46 = vld [vmem:[%s790_s1 + $0x50] sm:$0xff] }
  0x1e   :  { %v51_v52 = vld [vmem:[%s790_s1 + $0x28] sm:$0xff]  ;;  %v50_v53 = vld [vmem:[%s790_s1 + $0x20] sm:$0xff]  ;;  %v53_v2 = vld [vmem:[%s790_s1 + $0x38] sm:$0xff] }
  0x1f   :  { %532 = vmatpush3.bf16.msra.mxu0 %v584_v11  ;;  %569 = vmatpush3.bf16.msra.mxu1 %v584_v11  ;;  %v59_v59 = vld [vmem:[%s790_s1 + $0x68] sm:$0xff]  ;;  %v58_v60 = vld [vmem:[%s790_s1 + $0x60] sm:$0xff]  ;;  %v52_v3 = vld [vmem:[%s790_s1 + $0x30] sm:$0xff] }
  0x20   :  { %533 = vmatprep.subr.bf16.mxu0 %v585_v14  ;;  %562 = vmatprep.subr.bf16.mxu1 %v585_v14 }
  0x21   :  { %119 = vperm.xlu1 %581, %v41_v9   ;;  %114 = vperm.xlu0 %580, %v40_v10   ;;  %v61_v9 = vld [vmem:[%s790_s1 + $0x78] sm:$0xff]  ;;  %v60_v10 = vld [vmem:[%s790_s1 + $0x70] sm:$0xff]  ;;  %s642_s1 = smov [#allocation5]  }
  0x22   :  { %s412_s8 = sshll.u32 %s642_s1, 4  ;;  %s413_s8 = int_to_ptr.vmem [resolvable:$true] %s412_s8 }
  0x23   :  { %534 = vmatpush3.bf16.msra.mxu0 %v585_v14  ;;  %570 = vmatpush3.bf16.msra.mxu1 %v585_v14  ;;  %s612_s9 = scalar_lea.vmem %s413_s8, 1024  ;;  %p617_p9 = scmp.lt.s32.totalorder %s413_s8, %s413_s8 }
  0x24   :  { %535 = vmatprep.subr.bf16.mxu0 %v586_v17  ;;  %563 = vmatprep.subr.bf16.mxu1 %v586_v17  ;;  %p613_p8 = scmp.ne.s32.totalorder %s413_s8, %s612_s9  ;;  %p618_p10 = scmp.lt.s32.totalorder %s612_s9, %s612_s9 }
  0x25   :  { %89 = vperm.xlu1 %581, %v35_v12   ;;  %84 = vperm.xlu0 %580, %v34_v13  }
  0x26   :  { %p619_p11 = por %p618_p10, %p617_p9 }
  0x27   :  { %536 = vmatpush3.bf16.msra.mxu0 %v586_v17  ;;  %571 = vmatpush3.bf16.msra.mxu1 %v586_v17 }
  0x28   :  { %537 = vmatprep.subr.bf16.mxu0 %v587_v20  ;;  %564 = vmatprep.subr.bf16.mxu1 %v587_v20  ;;  %p620_p12 = pnand %p619_p11, %p613_p8 }
  0x29   :  { %129 = vperm.xlu1 %581, %v43_v15   ;;  %124 = vperm.xlu0 %580, %v42_v16  }
  0x2b   :  { %538 = vmatpush3.bf16.msra.mxu0 %v587_v20  ;;  %572 = vmatpush3.bf16.msra.mxu1 %v587_v20 }
  0x2c   :  { %539 = vmatprep.subr.bf16.mxu0 %v588_v23  ;;  %565 = vmatprep.subr.bf16.mxu1 %v588_v23 }
  0x2d   :  { %99 = vperm.xlu1 %581, %v37_v18   ;;  %94 = vperm.xlu0 %580, %v36_v19  }
  0x2f   :  { %540 = vmatpush3.bf16.msra.mxu0 %v588_v23  ;;  %573 = vmatpush3.bf16.msra.mxu1 %v588_v23 }
  0x30   :  { %541 = vmatprep.subr.bf16.mxu0 %v589_v24  ;;  %566 = vmatprep.subr.bf16.mxu1 %v589_v24 }
  0x31   :  { %139 = vperm.xlu1 %581, %v45_v21   ;;  %134 = vperm.xlu0 %580, %v44_v22  }
  0x33   :  { %542 = vmatpush3.bf16.msra.mxu0 %v589_v24  ;;  %574 = vmatpush3.bf16.msra.mxu1 %v589_v24 }
  0x94   :  { %v105_v25 = vpop.permute.xlu1 %104  ;;  %v65_v26 = vpop.permute.xlu0 %64 }
  0x95   :  { %v150_v33 = vmul.f32 %v105_v25, %v54_v27  ;;  %v142_v34 = vmul.f32 %v65_v26, %v46_v28 }
  0x98   :  { %v110_v31 = vpop.permute.xlu1 %109  ;;  %v70_v32 = vpop.permute.xlu0 %69 }
  0x99   :  { %v151_v35 = vmul.f32 %v110_v31, %v55_v29  ;;  %v143_v36 = vmul.f32 %v70_v32, %v47_v30 }
  0x9b   :  { %v158_v39 = vpack.c.bf16 %v143_v36, %v142_v34  ;;  %v162_v40 = vpack.c.bf16 %v151_v35, %v150_v33 }
  0x9c   :  { %v80_v41 = vpop.permute.xlu1 %79  ;;  %v75_v42 = vpop.permute.xlu0 %74 }
  0x9d   :  { %v145_v43 = vmul.f32 %v80_v41, %v49_v37  ;;  %v144_v44 = vmul.f32 %v75_v42, %v48_v38  ;;  %543 = vmatprep.mubr.bf16.mxu0 %v158_v39  ;;  %551 = vmatprep.mubr.bf16.mxu1 %v162_v40 }
  0x9f   :  { %v159_v47 = vpack.c.bf16 %v145_v43, %v144_v44 }
  0xa0   :  { %v120_v48 = vpop.permute.xlu1 %119  ;;  %v115_v49 = vpop.permute.xlu0 %114 }
  0xa1   :  { %v153_v50 = vmul.f32 %v120_v48, %v57_v45  ;;  %v152_v51 = vmul.f32 %v115_v49, %v56_v46  ;;  %544 = vmatmul.mubr.bf16.vlgmr.msra.gmra.mrb[0].mxu0 %v159_v47 }
  0xa3   :  { %v163_v54 = vpack.c.bf16 %v153_v50, %v152_v51 }
  0xa4   :  { %v90_v55 = vpop.permute.xlu1 %89  ;;  %v85_v56 = vpop.permute.xlu0 %84 }
  0xa5   :  { %v147_v57 = vmul.f32 %v90_v55, %v51_v52  ;;  %v146_v58 = vmul.f32 %v85_v56, %v50_v53  ;;  %552 = vmatmul.mubr.bf16.vlgmr.msra.gmra.mrb[0].mxu1 %v163_v54 }
  0xa7   :  { %v160_v61 = vpack.c.bf16 %v147_v57, %v146_v58 }
  0xa8   :  { %v130_v62 = vpop.permute.xlu1 %129  ;;  %v125_v63 = vpop.permute.xlu0 %124 }
  0xa9   :  { %v155_v0 = vmul.f32 %v130_v62, %v59_v59  ;;  %v154_v1 = vmul.f32 %v125_v63, %v58_v60  ;;  %547 = vmatprep.mubr.bf16.mxu0 %v160_v61 }
  0xab   :  { %v164_v4 = vpack.c.bf16 %v155_v0, %v154_v1 }
  0xac   :  { %v100_v5 = vpop.permute.xlu1 %99  ;;  %v95_v6 = vpop.permute.xlu0 %94 }
  0xad   :  { %v149_v7 = vmul.f32 %v100_v5, %v53_v2  ;;  %v148_v8 = vmul.f32 %v95_v6, %v52_v3  ;;  %555 = vmatprep.mubr.bf16.mxu1 %v164_v4 }
  0xaf   :  { %v161_v11 = vpack.c.bf16 %v149_v7, %v148_v8 }
  0xb0   :  { %v140_v12 = vpop.permute.xlu1 %139  ;;  %v135_v13 = vpop.permute.xlu0 %134 }
  0xb1   :  { %v157_v14 = vmul.f32 %v140_v12, %v61_v9  ;;  %v156_v15 = vmul.f32 %v135_v13, %v60_v10  ;;  %548 = vmatmul.mubr.bf16.gmra.mrb[4].mxu0 %v161_v11 }
  0xb3   :  { %v165_v16 = vpack.c.bf16 %v157_v14, %v156_v15 }
  0xb5   :  { %556 = vmatmul.mubr.bf16.gmra.mrb[4].mxu1 %v165_v16 }
 0x174   :  { %v545_v17 = vpop.f32.mrb[0].mxu0 }
 0x175   :  { %v264_v18 = vpop.f32.mrb[1].mxu0 }
 0x176   :  { %v546_v19 = vpop.f32.mrb[2].mxu0 }
 0x177   :  { %v472_v20 = vpack.c.bf16 %v546_v19, %v545_v17  ;;  %v267_v21 = vpop.f32.mrb[3].mxu0 }
 0x178   :  { %v467_v22 = vpack.c.bf16 %v267_v21, %v264_v18  ;;  %v553_v23 = vpop.f32.mrb[0].mxu1 }
 0x179   :  { %504 = vst [vmem:[#allocation5 + $0x8] sm:$0xff] %v472_v20   ;;  %v296_v24 = vpop.f32.mrb[1].mxu1 }
 0x17a   :  { %468 = vst [vmem:[#allocation5] sm:$0xff] %v467_v22   ;;  %v554_v25 = vpop.f32.mrb[2].mxu1 }
 0x17b   :  { %v492_v26 = vpack.c.bf16 %v554_v25, %v553_v23  ;;  %v299_v27 = vpop.f32.mrb[3].mxu1 }
 0x17c   :  { %v487_v28 = vpack.c.bf16 %v299_v27, %v296_v24 }
 0x17d   :  { %508 = vst [vmem:[#allocation5 + $0x28] sm:$0xff] %v492_v26  }
 0x17e   :  { %507 = vst [vmem:[#allocation5 + $0x20] sm:$0xff] %v487_v28  }
 0x184   :  { %v549_v29 = vpop.f32.mrb[4].mxu0 }
 0x185   :  { %v280_v30 = vpop.f32.mrb[5].mxu0 }
 0x186   :  { %v550_v31 = vpop.f32.mrb[6].mxu0 }
 0x187   :  { %v482_v32 = vpack.c.bf16 %v550_v31, %v549_v29  ;;  %v283_v33 = vpop.f32.mrb[7].mxu0 }
 0x188   :  { %v477_v34 = vpack.c.bf16 %v283_v33, %v280_v30  ;;  %v557_v35 = vpop.f32.mrb[4].mxu1 }
 0x189   :  { %506 = vst [vmem:[#allocation5 + $0x18] sm:$0xff] %v482_v32   ;;  %v312_v36 = vpop.f32.mrb[5].mxu1 }
 0x18a   :  { %505 = vst [vmem:[#allocation5 + $0x10] sm:$0xff] %v477_v34   ;;  %v558_v37 = vpop.f32.mrb[6].mxu1 }
 0x18b   :  { %v502_v38 = vpack.c.bf16 %v558_v37, %v557_v35  ;;  %v315_v39 = vpop.f32.mrb[7].mxu1 }
 0x18c   :  { %v497_v40 = vpack.c.bf16 %v315_v39, %v312_v36 }
 0x18d   :  { %510 = vst [vmem:[#allocation5 + $0x38] sm:$0xff] %v502_v38  }
 0x18e   :  { %509 = vst [vmem:[#allocation5 + $0x30] sm:$0xff] %v497_v40  }
 0x18f   :  { %623 = shalt.err (!%p620_p12)
}
 0x190   :  { %s624_s12 = scalar_lea.hbm %s792_s3, 1024 }
 0x191   :  { %p625_p13 = scmp.ne.s32.totalorder %s792_s3, %s624_s12  ;;  %p628_p0 = scmp.lt.u32.totalorder %s624_s12, %s792_s3 }
 0x193   :  { %p630_p1 = pnand %p628_p0, %p625_p13 }
 0x195   :  { %633 = shalt.err (!%p630_p1)
}
 0x196   :  { %418 = dma.vmem_to_hbm [thread:$0]  %s413_s8, 1024, %s792_s3, [#allocation4], %s639_s22, %s639_s22, %s640_s23  }
 0x197   :  { %636 = dma.done.wait [#allocation4], 1024  }
 0x198   :  { %637 = vsyncadd [#allocation4], 4294966272 }
 0x199   :  { %422 = vsyncpa [#allocation3], 1 }
 0x19a   :  { %423 = vsyncpa [#allocation4], 1 }

</bundles_post_ra>
